<compile_context>
chip_gen: v7x
topology: tpu7x:2x2x1
jax: 0.10.0
libtpu: 0.0.40
codegen_flags: <defaults>
</compile_context>

<pallas_src>
import jax
import jax.numpy as jnp
from jax.experimental import pallas as pl
from jax.experimental.pallas import tpu as pltpu


def _sublane(dtype) -> int:
    return 16 if jnp.dtype(dtype) == jnp.dtype(jnp.bfloat16) else 8


def _round_up(x: int, m: int) -> int:
    return ((x + m - 1) // m) * m


# ---------------------------------------------------------------------------
# Kernels
# ---------------------------------------------------------------------------
def _gate3_body(x1_full, x1_slab, x2_ref, wp_ref, bp_ref, wz_ref, bz_ref,
                o_ref):
    """x1_full: (tm, d1) rows used as matmul LHS; x1_slab: (tm, tn) residual."""
    wp = wp_ref[...]                    # (d2p, tn) column slab of Wp^T
    wz = wz_ref[...]                    # (d1,  tn) column slab of Wz^T
    x2 = x2_ref[...]                    # (tm, d2p)

    # Run the MXU in the weight dtype (bf16 weights -> bf16 matmul even for
    # f32 activations), always accumulating in f32.
    x1m = x1_full if x1_full.dtype == wz.dtype else x1_full.astype(wz.dtype)
    x2m = x2 if x2.dtype == wp.dtype else x2.astype(wp.dtype)

    x2p = jnp.dot(x2m, wp, preferred_element_type=jnp.float32) + bp_ref[...]
    z = jnp.dot(x1m, wz, preferred_element_type=jnp.float32) + bz_ref[...]
    gate = jax.nn.sigmoid(z)

    # Residual / gate epilogue in f32, cast once to the output dtype.
    o_ref[...] = (x1_slab.astype(jnp.float32) + gate * x2p).astype(o_ref.dtype)


def gate3_kernel_resident(x1_ref, x2_ref, wp_ref, bp_ref, wz_ref, bz_ref,
                          o_ref):
    # tn == d1: the x1 block is both the matmul LHS and the residual slab.
    x1 = x1_ref[...]
    _gate3_body(x1, x1, x2_ref, wp_ref, bp_ref, wz_ref, bz_ref, o_ref)


def gate3_kernel_tiled(x1_ref, x1s_ref, x2_ref, wp_ref, bp_ref, wz_ref, bz_ref,
                       o_ref):
    # Column-tiled weights: x1 is passed twice (full-K block + (tm, tn) slab),
    # avoiding an in-kernel dynamic lane-dimension slice.
    _gate3_body(x1_ref[...], x1s_ref[...], x2_ref, wp_ref, bp_ref, wz_ref,
                bz_ref, o_ref)


# ---------------------------------------------------------------------------
# Parameter prep (one-time, OUTSIDE the hot path)
# ---------------------------------------------------------------------------
def prepare_gate3_params(w_proj, b_proj, w_wz, b_wz, *, weight_dtype=None,
                         pad_k_to=128):
    """One-time repack of torch-layout Linear params.

    In:  w_proj [x1_dim, x2_dim], b_proj [x1_dim],
         w_wz   [x1_dim, x1_dim], b_wz   [x1_dim].
    Out: (Wp^T [x2_dim_padded, x1_dim], bp [1, x1_dim] f32,
          Wz^T [x1_dim, x1_dim],        bz [1, x1_dim] f32).

    weight_dtype: optionally cast weights (e.g. jnp.bfloat16 so the MXU runs a
    bf16 pass even with f32 activations).  Wp^T's contraction dim is
    zero-padded to a multiple of `pad_k_to` (exact: zero rows add nothing).
    """
    w_proj = jnp.asarray(w_proj)
    w_wz = jnp.asarray(w_wz)
    if weight_dtype is not None:
        w_proj = w_proj.astype(weight_dtype)
        w_wz = w_wz.astype(weight_dtype)
    d1, d2 = w_proj.shape
    wp_t = w_proj.T                                      # [d2, d1]
    if pad_k_to and d2 % pad_k_to != 0:
        d2p = _round_up(d2, pad_k_to)
        wp_t = jnp.pad(wp_t, ((0, d2p - d2), (0, 0)))
    return (wp_t,
            jnp.asarray(b_proj, jnp.float32).reshape(1, d1),
            w_wz.T,
            jnp.asarray(b_wz, jnp.float32).reshape(1, d1))


# ---------------------------------------------------------------------------
# Hardware queries / tiling heuristics
# ---------------------------------------------------------------------------
def _default_vmem_limit_bytes() -> int:
    try:
        phys = int(pltpu.get_tpu_info().vmem_capacity_bytes)
    except Exception:
        phys = 64 * 1024 * 1024        # conservative (v7x-sized) fallback
    # Leave ~16 MiB of compiler headroom; cap at 112 MiB.
    # -> ~112 MiB on v5e/v6e (128 MiB physical), 48 MiB on v7x (64 MiB).
    return max(32 * 1024 * 1024,
               min(phys - 16 * 1024 * 1024, 112 * 1024 * 1024))


def _num_tensorcores() -> int:
    try:
        n = getattr(jax.devices()[0], "num_cores", None)
        if n:
            return int(n)
    except Exception:
        pass
    return 1


def _plan_tiles(M, d1, d2p, act_dtype, w_dtype, out_dtype, vmem_limit_bytes,
                num_cores):
    """Pick (tm, tn): row tile and weight column-slab width.

    Prefers fully-resident weights (tn = d1); switches to column slabs (tn a
    multiple of 128 dividing d1) when the resident weights would squeeze the
    row tile below ~256 rows or overflow the budget.
    """
    sub = _sublane(act_dtype)
    act = jnp.dtype(act_dtype).itemsize
    wsz = jnp.dtype(w_dtype).itemsize
    osz = jnp.dtype(out_dtype).itemsize
    usable = int(0.7 * vmem_limit_bytes)          # headroom for compiler scratch
    m_cap = _round_up(min(M, 1024), sub)

    def weight_bytes(tn):
        # Wp^T (d2p,tn) + Wz^T (d1,tn) + two f32 biases; double-buffered specs.
        return 2 * ((d2p + d1) * tn * wsz + 2 * tn * 4)

    def per_row_bytes(tn):
        # Double-buffered x1 (K=d1) + x2 (K=d2p) inputs and (tn) output, the
        # extra x1 residual slab when column-tiled, ~4 f32 intermediates
        # (x2p, z/gate, x1_f32, product) and MXU-dtype casts of x1/x2.
        per = 2 * act * (d1 + d2p) + 2 * osz * tn + 4 * 4 * tn
        if tn != d1:
            per += 2 * act * tn
        if jnp.dtype(w_dtype) != jnp.dtype(act_dtype):
            per += wsz * (d1 + d2p)
        return per

    def max_tm(tn):
        rem = usable - weight_bytes(tn)
        if rem <= 0:
            return 0
        return min(m_cap, (rem // per_row_bytes(tn)) // sub * sub)

    # Column-slab candidates: resident weights first, then progressively
    # narrower multiples of 128 that divide x1_dim evenly.
    cands = [d1]
    if d1 % 128 == 0 and d1 > 128:
        k = d1 // 128
        cands += [128 * f for f in range(k - 1, 0, -1) if k % f == 0]

    want_tm = min(m_cap, 256)
    tm = tn = None
    for c in cands:
        t = max_tm(c)
        if t >= want_tm:
            tn, tm = c, t
            break
    if tn is None:                      # take whatever rows fit
        for c in cands:
            t = max_tm(c)
            if t >= sub:
                tn, tm = c, t
                break
    if tn is None:
        # TODO(synk): add a K grid axis (tile the contraction) for this case.
        raise ValueError("Gate3 weights exceed the VMEM budget even with "
                         "128-wide column slabs; K-tiling would be required.")

    # Only multi-TensorCore parts (v7x) benefit from splitting a single big
    # tile; target >= 2 grid steps per core there, keep one tile elsewhere.
    if num_cores > 1:
        while pl.cdiv(d1, tn) * pl.cdiv(M, tm) < 2 * num_cores:
            new_tm = max(sub, (tm // 2) // sub * sub)
            if new_tm == tm:
                break
            tm = new_tm
    return tm, tn


# ---------------------------------------------------------------------------
# Public wrapper
# ---------------------------------------------------------------------------
def gate3(x1, x2, wp_t, bp, wz_t, bz, *, tm=None, tn=None,
          vmem_limit_bytes=None):
    """x1: [M, x1_dim], x2: [M, x2_dim].

    wp_t: [x2_dim_padded, x1_dim], wz_t: [x1_dim, x1_dim] (pre-transposed; see
    prepare_gate3_params).  bp/bz: [1, x1_dim] float32.
    """
    M, d1 = x1.shape
    M2, d2 = x2.shape
    assert M == M2, (M, M2)
    d2p = wp_t.shape[0]
    assert wp_t.shape[1] == d1 and d2p >= d2, (wp_t.shape, d1, d2)
    assert wz_t.shape == (d1, d1), wz_t.shape
    assert bp.shape == (1, d1) and bz.shape == (1, d1)

    if d2p != d2:
        # Zero K-padding of x2 to match the padded Wp^T rows (exact).
        x2 = jnp.pad(x2, ((0, 0), (0, d2p - d2)))

    if vmem_limit_bytes is None:
        vmem_limit_bytes = _default_vmem_limit_bytes()

    auto_tm, auto_tn = _plan_tiles(M, d1, d2p, x1.dtype, wz_t.dtype, x1.dtype,
                                   vmem_limit_bytes, _num_tensorcores())
    tm = auto_tm if tm is None else tm
    tn = auto_tn if tn is None else tn
    sub = _sublane(x1.dtype)
    assert tm % sub == 0, (tm, sub)
    assert tn == d1 or (tn % 128 == 0 and d1 % tn == 0), (tn, d1)

    n_i = pl.cdiv(M, tm)                # rows  (inner grid axis)
    n_j = pl.cdiv(d1, tn)               # weight column slabs (outer grid axis)

    isz = jnp.dtype(x1.dtype).itemsize
    wsz = jnp.dtype(wz_t.dtype).itemsize
    cost = pl.CostEstimate(
        flops=2 * M * d1 * (d1 + d2p),
        transcendentals=M * d1,
        bytes_accessed=int(n_j * M * (d1 + d2p) * isz          # streamed acts
                           + (d1 + d2p) * d1 * wsz + 2 * d1 * 4  # weights+bias
                           + M * d1 * isz))                      # output

    x1_kspec = pl.BlockSpec((tm, d1), lambda j, i: (i, 0))    # full-K LHS rows
    x2_spec = pl.BlockSpec((tm, d2p), lambda j, i: (i, 0))
    wp_spec = pl.BlockSpec((d2p, tn), lambda j, i: (0, j))
    bp_spec = pl.BlockSpec((1, tn), lambda j, i: (0, j))
    wz_spec = pl.BlockSpec((d1, tn), lambda j, i: (0, j))
    bz_spec = pl.BlockSpec((1, tn), lambda j, i: (0, j))
    out_spec = pl.BlockSpec((tm, tn), lambda j, i: (i, j))

    if n_j == 1:
        kernel = gate3_kernel_resident
        in_specs = [x1_kspec, x2_spec, wp_spec, bp_spec, wz_spec, bz_spec]
        args = (x1, x2, wp_t, bp, wz_t, bz)
    else:
        kernel = gate3_kernel_tiled
        x1_sspec = pl.BlockSpec((tm, tn), lambda j, i: (i, j))  # residual slab
        in_specs = [x1_kspec, x1_sspec, x2_spec, wp_spec, bp_spec, wz_spec,
                    bz_spec]
        args = (x1, x1, x2, wp_t, bp, wz_t, bz)

    return pl.pallas_call(
        kernel,
        out_shape=jax.ShapeDtypeStruct((M, d1), x1.dtype),
        grid_spec=pltpu.PrefetchScalarGridSpec(
            num_scalar_prefetch=0,
            grid=(n_j, n_i),
            in_specs=in_specs,
            out_specs=out_spec),
        compiler_params=pltpu.CompilerParams(
            dimension_semantics=("parallel", "parallel"),
            vmem_limit_bytes=int(vmem_limit_bytes)),
        cost_estimate=cost,
    )(*args)


# ---------------------------------------------------------------------------
# Pure-JAX reference (torch-layout params)
# ---------------------------------------------------------------------------
def gate3_ref(x1, x2, w_proj, b_proj, w_wz, b_wz):
    x2p = x2 @ w_proj.T + b_proj
    gate = jax.nn.sigmoid(x1 @ w_wz.T + b_wz)
    return x1 + gate * x2p


if __name__ == "__main__":
    # Small shapes: batch=2, seq=8 -> M=16 rows; x1_dim=128, x2_dim=64.
    batch, seq = 2, 8
    x1_dim, x2_dim = 128, 64
    M = batch * seq

    key = jax.random.PRNGKey(0)
    k1, k2, k3, k4, k5, k6 = jax.random.split(key, 6)

    x1 = jax.random.normal(k1, (M, x1_dim), dtype=jnp.float32)
    x2 = jax.random.normal(k2, (M, x2_dim), dtype=jnp.float32)

    # Deterministic synthetic nn.Linear parameters (torch layout).
    w_proj = jax.random.normal(k3, (x1_dim, x2_dim), dtype=jnp.float32) * 0.05
    b_proj = jax.random.normal(k4, (x1_dim,), dtype=jnp.float32) * 0.05
    w_wz = jax.random.normal(k5, (x1_dim, x1_dim), dtype=jnp.float32) * 0.05
    b_wz = jax.random.normal(k6, (x1_dim,), dtype=jnp.float32) * 0.05

    ref = gate3_ref(x1, x2, w_proj, b_proj, w_wz, b_wz)

    # ---- f32 path ----
    params_f32 = jax.block_until_ready(
        prepare_gate3_params(w_proj, b_proj, w_wz, b_wz))
    out = jax.block_until_ready(gate3(x1, x2, *params_f32))
    assert out.shape == (M, x1_dim)
    assert jnp.allclose(out, ref, atol=1e-5, rtol=1e-5), "f32 mismatch vs ref"

    # ---- ragged M (cdiv partial row block; M not a multiple of 8) ----
    Mr = 13
    out_r = jax.block_until_ready(gate3(x1[:Mr], x2[:Mr], *params_f32))
    assert out_r.shape == (Mr, x1_dim)
    assert jnp.allclose(out_r, ref[:Mr], atol=1e-5, rtol=1e-5), \
        "ragged-M mismatch vs ref"

    # ---- bf16 activations + bf16 weights (bf16 MXU, f32 accumulate) ----
    x1_bf = x1.astype(jnp.bfloat16)
    x2_bf = x2.astype(jnp.bfloat16)
    params_bf = jax.block_until_ready(
        prepare_gate3_params(w_proj.astype(jnp.bfloat16), b_proj,
                             w_wz.astype(jnp.bfloat16), b_wz))
    out_bf = jax.block_until_ready(gate3(x1_bf, x2_bf, *params_bf))
    ref_bf = gate3_ref(x1_bf.astype(jnp.float32), x2_bf.astype(jnp.float32),
                       w_proj.astype(jnp.bfloat16).astype(jnp.float32), b_proj,
                       w_wz.astype(jnp.bfloat16).astype(jnp.float32), b_wz)
    assert out_bf.shape == (M, x1_dim)
    assert jnp.allclose(out_bf.astype(jnp.float32), ref_bf,
                        atol=5e-2, rtol=5e-2), "bf16 mismatch vs ref"

    # ---- f32 activations + bf16 weights (bf16 MXU path for f32 inputs) ----
    params_mx = jax.block_until_ready(
        prepare_gate3_params(w_proj, b_proj, w_wz, b_wz,
                             weight_dtype=jnp.bfloat16))
    out_mx = jax.block_until_ready(gate3(x1, x2, *params_mx))
    ref_mx = gate3_ref(x1, x2,
                       w_proj.astype(jnp.bfloat16).astype(jnp.float32), b_proj,
                       w_wz.astype(jnp.bfloat16).astype(jnp.float32), b_wz)
    assert out_mx.shape == (M, x1_dim)
    assert jnp.allclose(out_mx, ref_mx, atol=5e-2, rtol=5e-2), \
        "mixed-precision mismatch vs ref"

    print("KERNEL_OK")
</pallas_src>

<mosaic_0001>
module attributes {stable_mosaic.version = 11 : i64} {
  func.func @gate3_kernel_resident(%arg0: i32, %arg1: i32, %arg2: memref<16x128xf32, #tpu.memory_space<vmem>>, %arg3: memref<16x128xf32, #tpu.memory_space<vmem>>, %arg4: memref<128x128xf32, #tpu.memory_space<vmem>>, %arg5: memref<1x128xf32, #tpu.memory_space<vmem>>, %arg6: memref<128x128xf32, #tpu.memory_space<vmem>>, %arg7: memref<1x128xf32, #tpu.memory_space<vmem>>, %arg8: memref<16x128xf32, #tpu.memory_space<vmem>>) attributes {dimension_semantics = [#tpu.dimension_semantics<parallel>, #tpu.dimension_semantics<parallel>], iteration_bounds = array<i64: 1, 1>, scalar_prefetch = 0 : i64, scratch_operands = 0 : i64, tpu.core_type = #tpu.core_type<tc>, window_params = [{transform_indices = @transform_0, window_bounds = array<i64: 16, 128>}, {transform_indices = @transform_1, window_bounds = array<i64: 16, 128>}, {transform_indices = @transform_2, window_bounds = array<i64: 128, 128>}, {transform_indices = @transform_3, window_bounds = array<i64: 1, 128>}, {transform_indices = @transform_4, window_bounds = array<i64: 128, 128>}, {transform_indices = @transform_5, window_bounds = array<i64: 1, 128>}, {transform_indices = @transform_6, window_bounds = array<i64: 16, 128>}]} {
    %c0 = arith.constant 0 : index
    %c0_0 = arith.constant 0 : index
    %0 = vector.load %arg2[%c0, %c0_0] : memref<16x128xf32, #tpu.memory_space<vmem>>, vector<16x128xf32>
    %c0_1 = arith.constant 0 : index
    %c0_2 = arith.constant 0 : index
    %1 = vector.load %arg4[%c0_1, %c0_2] : memref<128x128xf32, #tpu.memory_space<vmem>>, vector<128x128xf32>
    %c0_3 = arith.constant 0 : index
    %c0_4 = arith.constant 0 : index
    %2 = vector.load %arg6[%c0_3, %c0_4] : memref<128x128xf32, #tpu.memory_space<vmem>>, vector<128x128xf32>
    %c0_5 = arith.constant 0 : index
    %c0_6 = arith.constant 0 : index
    %3 = vector.load %arg3[%c0_5, %c0_6] : memref<16x128xf32, #tpu.memory_space<vmem>>, vector<16x128xf32>
    %cst = arith.constant dense<0.000000e+00> : vector<16x128xf32>
    %4 = tpu.matmul %3, %1, %cst {dimension_numbers = #tpu.dot_dimension_numbers<[1], [0], [0], [1], [0, 0, 1, 1], [], []>} : vector<16x128xf32>, vector<128x128xf32>, vector<16x128xf32> -> vector<16x128xf32>
    %c0_7 = arith.constant 0 : index
    %c0_8 = arith.constant 0 : index
    %5 = vector.load %arg5[%c0_7, %c0_8] : memref<1x128xf32, #tpu.memory_space<vmem>>, vector<1x128xf32>
    %6 = vector.broadcast %5 : vector<1x128xf32> to vector<16x128xf32>
    %7 = arith.addf %4, %6 : vector<16x128xf32>
    %cst_9 = arith.constant dense<0.000000e+00> : vector<16x128xf32>
    %8 = tpu.matmul %0, %2, %cst_9 {dimension_numbers = #tpu.dot_dimension_numbers<[1], [0], [0], [1], [0, 0, 1, 1], [], []>} : vector<16x128xf32>, vector<128x128xf32>, vector<16x128xf32> -> vector<16x128xf32>
    %c0_10 = arith.constant 0 : index
    %c0_11 = arith.constant 0 : index
    %9 = vector.load %arg7[%c0_10, %c0_11] : memref<1x128xf32, #tpu.memory_space<vmem>>, vector<1x128xf32>
    %10 = vector.broadcast %9 : vector<1x128xf32> to vector<16x128xf32>
    %11 = arith.addf %8, %10 : vector<16x128xf32>
    %12 = arith.negf %11 : vector<16x128xf32>
    %13 = math.exp %12 : vector<16x128xf32>
    %cst_12 = arith.constant 1.000000e+00 : f32
    %14 = vector.broadcast %cst_12 : f32 to vector<16x128xf32>
    %15 = arith.addf %14, %13 : vector<16x128xf32>
    %16 = arith.divf %14, %15 : vector<16x128xf32>
    %17 = arith.mulf %16, %7 : vector<16x128xf32>
    %18 = arith.addf %0, %17 : vector<16x128xf32>
    %c0_13 = arith.constant 0 : index
    %c0_14 = arith.constant 0 : index
    %19 = vector.load %arg8[%c0_13, %c0_14] : memref<16x128xf32, #tpu.memory_space<vmem>>, vector<16x128xf32>
    tpu.vector_store %arg8[%c0_13, %c0_14], %18 {strides = array<i32>} : memref<16x128xf32, #tpu.memory_space<vmem>>, vector<16x128xf32>,
    return
  }
  func.func @transform_0(%arg0: i32, %arg1: i32) -> (i32, i32) {
    %c0_i32 = arith.constant 0 : i32
    %c0_i32_0 = arith.constant 0 : i32
    return %arg1, %c0_i32 : i32, i32
  }
  func.func @transform_1(%arg0: i32, %arg1: i32) -> (i32, i32) {
    %c0_i32 = arith.constant 0 : i32
    %c0_i32_0 = arith.constant 0 : i32
    return %arg1, %c0_i32 : i32, i32
  }
  func.func @transform_2(%arg0: i32, %arg1: i32) -> (i32, i32) {
    %c0_i32 = arith.constant 0 : i32
    %c0_i32_0 = arith.constant 0 : i32
    return %c0_i32, %arg0 : i32, i32
  }
  func.func @transform_3(%arg0: i32, %arg1: i32) -> (i32, i32) {
    %c0_i32 = arith.constant 0 : i32
    %c0_i32_0 = arith.constant 0 : i32
    return %c0_i32, %arg0 : i32, i32
  }
  func.func @transform_4(%arg0: i32, %arg1: i32) -> (i32, i32) {
    %c0_i32 = arith.constant 0 : i32
    %c0_i32_0 = arith.constant 0 : i32
    return %c0_i32, %arg0 : i32, i32
  }
  func.func @transform_5(%arg0: i32, %arg1: i32) -> (i32, i32) {
    %c0_i32 = arith.constant 0 : i32
    %c0_i32_0 = arith.constant 0 : i32
    return %c0_i32, %arg0 : i32, i32
  }
  func.func @transform_6(%arg0: i32, %arg1: i32) -> (i32, i32) {
    %c0_i32 = arith.constant 0 : i32
    return %arg1, %arg0 : i32, i32
  }
}

</mosaic_0001>

<bundles_post_ra>
// kernel: tpu_custom_call.1
= control target key start
LH: loop header
LB: loop body
LE: loop exit
PB: predicated region body
PF: predicated region fallthrough
CT: control target
= control target key end

     0   :  { %11 = vsyncpa [#allocation3], 0  ;;  %s764_s0 = inlined_call_operand.hbm [shape: f32[16,128], index: 0, kind: input, shape index: {}]   ;;  %s765_s1 = inlined_call_operand.hbm [shape: f32[16,128], index: 1, kind: input, shape index: {}]   ;;  %s766_s2 = inlined_call_operand.hbm [shape: f32[128,128], index: 2, kind: input, shape index: {}]   ;;  %s767_s3 = inlined_call_operand.vmem [shape: f32[1,128], index: 3, kind: input, shape index: {}]   ;;  %s768_s4 = inlined_call_operand.hbm [shape: f32[128,128], index: 4, kind: input, shape index: {}]   ;;  %s769_s5 = inlined_call_operand.vmem [shape: f32[1,128], index: 5, kind: input, shape index: {}]   ;;  %s770_s6 = inlined_call_operand.hbm [shape: f32[16,128], index: 6, kind: output, shape index: {}]  }
   0x1   :  { %12 = vsyncpa [#allocation6], 0 }
   0x2   :  { %13 = vsyncpa [#allocation9], 0 }
   0x3   :  { %14 = vsyncpa [#allocation4], 0  ;;  %s623_s21 = smov [#allocation5]   ;;  %s624_s23 = smov [#allocation2]  }
   0x4   :  { %s32_s22 = sshll.u32 %s623_s21, 4  ;;  %s20_s24 = sshll.u32 %s624_s23, 4  ;;  %s33_s22 = int_to_ptr.vmem [resolvable:$true] %s32_s22  ;;  %s665_s24 = int_to_ptr.vmem [resolvable:$true] %s20_s24 }
   0x5   :  { %s505_s27 = scalar_lea.hbm %s765_s1, 256 }
   0x6   :  { %p506_p0 = scmp.ne.s32.totalorder %s765_s1, %s505_s27  ;;  %p509_p1 = scmp.lt.u32.totalorder %s505_s27, %s765_s1 }
   0x8   :  { %p511_p2 = pnand %p509_p1, %p506_p0 }
   0xa   :  { %514 = shalt.err (!%p511_p2)
}
   0xb   :  { %s515_s8 = scalar_lea.vmem %s33_s22, 256  ;;  %p520_p4 = scmp.lt.s32.totalorder %s33_s22, %s33_s22 }
   0xc   :  { %p516_p3 = scmp.ne.s32.totalorder %s33_s22, %s515_s8  ;;  %p521_p5 = scmp.lt.s32.totalorder %s515_s8, %s515_s8 }
   0xe   :  { %p522_p6 = por %p521_p5, %p520_p4 }
  0x10   :  { %p523_p7 = pnand %p522_p6, %p516_p3 }
  0x12   :  { %526 = shalt.err (!%p523_p7)
}
  0x13   :  { %s625_s9 = smov 128   ;;  %s626_s10 = smov 8  }
  0x14   :  { %38 = dma.hbm_to_vmem [thread:$0]  %s765_s1, 256, %s33_s22, [#allocation6], %s625_s9, %s625_s9, %s626_s10  }
  0x15   :  { %s527_s15 = scalar_lea.hbm %s764_s0, 256 }
  0x16   :  { %p528_p8 = scmp.ne.s32.totalorder %s764_s0, %s527_s15  ;;  %p531_p9 = scmp.lt.u32.totalorder %s527_s15, %s764_s0 }
  0x18   :  { %p533_p10 = pnand %p531_p9, %p528_p8 }
  0x1a   :  { %536 = shalt.err (!%p533_p10)
}
  0x1b   :  { %s537_s20 = scalar_lea.vmem %s665_s24, 256  ;;  %p542_p12 = scmp.lt.s32.totalorder %s665_s24, %s665_s24 }
  0x1c   :  { %p538_p11 = scmp.ne.s32.totalorder %s665_s24, %s537_s20  ;;  %p543_p13 = scmp.lt.s32.totalorder %s537_s20, %s537_s20 }
  0x1e   :  { %p544_p0 = por %p543_p13, %p542_p12 }
  0x20   :  { %p545_p1 = pnand %p544_p0, %p538_p11 }
  0x22   :  { %548 = shalt.err (!%p545_p1)
}
  0x23   :  { %26 = dma.hbm_to_vmem [thread:$0]  %s764_s0, 256, %s665_s24, [#allocation3], %s625_s9, %s625_s9, %s626_s10  }
  0x24   :  { %s627_s22 = smov [#allocation7]   ;;  %s628_s25 = smov [#allocation8]  }
  0x25   :  { %s44_s23 = sshll.u32 %s627_s22, 4  ;;  %s58_s26 = sshll.u32 %s628_s25, 4  ;;  %s45_s23 = int_to_ptr.vmem [resolvable:$true] %s44_s23  ;;  %s702_s26 = int_to_ptr.vmem [resolvable:$true] %s58_s26 }
  0x26   :  { %s549_s29 = scalar_lea.hbm %s766_s2, 2048 }
  0x27   :  { %p550_p2 = scmp.ne.s32.totalorder %s766_s2, %s549_s29  ;;  %p553_p3 = scmp.lt.u32.totalorder %s549_s29, %s766_s2 }
  0x29   :  { %p555_p4 = pnand %p553_p3, %p550_p2 }
  0x2b   :  { %558 = shalt.err (!%p555_p4)
}
  0x2c   :  { %s559_s0 = scalar_lea.vmem %s45_s23, 2048  ;;  %p564_p6 = scmp.lt.s32.totalorder %s45_s23, %s45_s23 }
  0x2d   :  { %p560_p5 = scmp.ne.s32.totalorder %s45_s23, %s559_s0  ;;  %p565_p7 = scmp.lt.s32.totalorder %s559_s0, %s559_s0 }
  0x2f   :  { %p566_p8 = por %p565_p7, %p564_p6 }
  0x31   :  { %p567_p9 = pnand %p566_p8, %p560_p5 }
  0x33   :  { %570 = shalt.err (!%p567_p9)
}
  0x34   :  { %50 = dma.hbm_to_vmem [thread:$0]  %s766_s2, 2048, %s45_s23, [#allocation6], %s625_s9, %s625_s9, %s626_s10  }
  0x35   :  { %s571_s15 = scalar_lea.hbm %s768_s4, 2048 }
  0x36   :  { %p572_p10 = scmp.ne.s32.totalorder %s768_s4, %s571_s15  ;;  %p575_p11 = scmp.lt.u32.totalorder %s571_s15, %s768_s4 }
  0x38   :  { %p577_p12 = pnand %p575_p11, %p572_p10 }
  0x3a   :  { %580 = shalt.err (!%p577_p12)
}
  0x3b   :  { %s581_s20 = scalar_lea.vmem %s702_s26, 2048  ;;  %p586_p0 = scmp.lt.s32.totalorder %s702_s26, %s702_s26 }
  0x3c   :  { %p582_p13 = scmp.ne.s32.totalorder %s702_s26, %s581_s20  ;;  %p587_p1 = scmp.lt.s32.totalorder %s581_s20, %s581_s20 }
  0x3e   :  { %p588_p2 = por %p587_p1, %p586_p0 }
  0x40   :  { %p589_p3 = pnand %p588_p2, %p582_p13 }
  0x42   :  { %592 = shalt.err (!%p589_p3)
}
  0x43   :  { %64 = dma.hbm_to_vmem [thread:$0]  %s768_s4, 2048, %s702_s26, [#allocation9], %s625_s9, %s625_s9, %s626_s10  }
  0x44   :  { %615 = dma.done.wait [#allocation3], 256  }
  0x45   :  { %616 = vsyncadd [#allocation3], 4294967040 }
  0x46   :  { %617 = dma.done.wait [#allocation6], 2304  }
  0x47   :  { %618 = vsyncadd [#allocation6], 4294964992 }
  0x48   :  { %619 = dma.done.wait [#allocation9], 2048  }
  0x49   :  { %620 = vsyncadd [#allocation9], 4294965248  ;;  %v97_v0 = vld [vmem:[#allocation8] sm:$0xff]  ;;  %v98_v1 = vld [vmem:[#allocation8 + $0x8] sm:$0xff] }
  0x4a   :  { %v99_v2 = vld [vmem:[#allocation8 + $0x10] sm:$0xff]  ;;  %v458_v3 = vpack.c.bf16 %v98_v1, %v97_v0  ;;  %v100_v4 = vld [vmem:[#allocation8 + $0x18] sm:$0xff]  ;;  %v101_v6 = vld [vmem:[#allocation8 + $0x20] sm:$0xff] }
  0x4b   :  { %v462_v5 = vpack.c.bf16 %v100_v4, %v99_v2  ;;  %v102_v7 = vld [vmem:[#allocation8 + $0x28] sm:$0xff]  ;;  %v81_v8 = vld [vmem:[#allocation7] sm:$0xff]  ;;  %v103_v10 = vld [vmem:[#allocation8 + $0x30] sm:$0xff] }
  0x4c   :  { %459 = vmatprep.subr.bf16.mxu1 %v458_v3  ;;  %v466_v9 = vpack.c.bf16 %v102_v7, %v101_v6  ;;  %v104_v11 = vld [vmem:[#allocation8 + $0x38] sm:$0xff]  ;;  %v82_v12 = vld [vmem:[#allocation7 + $0x8] sm:$0xff]  ;;  %v83_v14 = vld [vmem:[#allocation7 + $0x10] sm:$0xff] }
  0x4d   :  { %461 = vmatpush3.bf16.msra.mxu1 %v458_v3  ;;  %v426_v13 = vpack.c.bf16 %v82_v12, %v81_v8  ;;  %v84_v15 = vld [vmem:[#allocation7 + $0x18] sm:$0xff]  ;;  %v739_v16 = vld [vmem:[#allocation2] sm:$0xff]  ;;  %v86_v19 = vld [vmem:[#allocation7 + $0x28] sm:$0xff]  ;;  %v470_v20 = vpack.c.bf16 %v104_v11, %v103_v10 }
  0x4e   :  { %463 = vmatprep.subr.bf16.mxu1 %v462_v5  ;;  %v430_v17 = vpack.c.bf16 %v84_v15, %v83_v14  ;;  %423 = vmatprep.mubr.f32.mxu1 %v739_v16  ;;  %v85_v18 = vld [vmem:[#allocation7 + $0x20] sm:$0xff]  ;;  %v106_v22 = vld [vmem:[#allocation8 + $0x48] sm:$0xff]  ;;  %v87_v24 = vld [vmem:[#allocation7 + $0x30] sm:$0xff] }
  0x4f   :  { %427 = vmatprep.subr.bf16.mxu0 %v426_v13  ;;  %v105_v21 = vld [vmem:[#allocation8 + $0x40] sm:$0xff]  ;;  %v434_v23 = vpack.c.bf16 %v86_v19, %v85_v18  ;;  %v88_v25 = vld [vmem:[#allocation7 + $0x38] sm:$0xff]  ;;  %v113_v26 = vld [vmem:[#allocation5] sm:$0xff] }
  0x50   :  { %429 = vmatpush3.bf16.msra.mxu0 %v426_v13  ;;  %388 = vmatprep.mubr.f32.mxu0 %v113_v26  ;;  %v474_v27 = vpack.c.bf16 %v106_v22, %v105_v21  ;;  %v107_v28 = vld [vmem:[#allocation8 + $0x50] sm:$0xff]  ;;  %v108_v29 = vld [vmem:[#allocation8 + $0x58] sm:$0xff]  ;;  %v438_v30 = vpack.c.bf16 %v88_v25, %v87_v24  ;;  %v89_v31 = vld [vmem:[#allocation7 + $0x40] sm:$0xff] }
  0x51   :  { %465 = vmatpush3.bf16.msra.mxu1 %v462_v5  ;;  %431 = vmatprep.subr.bf16.mxu0 %v430_v17  ;;  %v90_v32 = vld [vmem:[#allocation7 + $0x48] sm:$0xff]  ;;  %v478_v33 = vpack.c.bf16 %v108_v29, %v107_v28  ;;  %v109_v34 = vld [vmem:[#allocation8 + $0x60] sm:$0xff]  ;;  %v91_v37 = vld [vmem:[#allocation7 + $0x50] sm:$0xff] }
  0x52   :  { %467 = vmatprep.subr.bf16.mxu1 %v466_v9  ;;  %v110_v35 = vld [vmem:[#allocation8 + $0x68] sm:$0xff]  ;;  %v442_v36 = vpack.c.bf16 %v90_v32, %v89_v31  ;;  %v92_v38 = vld [vmem:[#allocation7 + $0x58] sm:$0xff]  ;;  %v111_v40 = vld [vmem:[#allocation8 + $0x70] sm:$0xff] }
  0x53   :  { %v482_v39 = vpack.c.bf16 %v110_v35, %v109_v34  ;;  %v112_v41 = vld [vmem:[#allocation8 + $0x78] sm:$0xff]  ;;  %v446_v42 = vpack.c.bf16 %v92_v38, %v91_v37  ;;  %v93_v43 = vld [vmem:[#allocation7 + $0x60] sm:$0xff]  ;;  %v94_v44 = vld [vmem:[#allocation7 + $0x68] sm:$0xff] }
  0x54   :  { %433 = vmatpush3.bf16.msra.mxu0 %v430_v17  ;;  %v486_v45 = vpack.c.bf16 %v112_v41, %v111_v40  ;;  %v450_v46 = vpack.c.bf16 %v94_v44, %v93_v43  ;;  %v95_v47 = vld [vmem:[#allocation7 + $0x70] sm:$0xff]  ;;  %v96_v48 = vld [vmem:[#allocation7 + $0x78] sm:$0xff]  ;;  %v80_v50 = vld [vmem:[#allocation2 + $0x8] sm:$0xff] }
  0x55   :  { %469 = vmatpush3.bf16.msra.mxu1 %v466_v9  ;;  %435 = vmatprep.subr.bf16.mxu0 %v434_v23  ;;  %v454_v49 = vpack.c.bf16 %v96_v48, %v95_v47  ;;  %v114_v51 = vld [vmem:[#allocation5 + $0x8] sm:$0xff]  ;;  %v317_v52 = vld [vmem:[%s769_s5] ss:$0 sm:$0xff]  ;;  %s629_s5 = smov [#allocation10]  }
  0x56   :  { %471 = vmatprep.subr.bf16.mxu1 %v470_v20  ;;  %v316_v1 = vld [vmem:[%s767_s3] ss:$0 sm:$0xff]  ;;  %s302_s25 = sshll.u32 %s629_s5, 4  ;;  %s303_s25 = int_to_ptr.vmem [resolvable:$true] %s302_s25 }
  0x57   :  { %s593_s26 = scalar_lea.vmem %s303_s25, 256  ;;  %p598_p5 = scmp.lt.s32.totalorder %s303_s25, %s303_s25 }
  0x58   :  { %437 = vmatpush3.bf16.msra.mxu0 %v434_v23  ;;  %p594_p4 = scmp.ne.s32.totalorder %s303_s25, %s593_s26  ;;  %p599_p6 = scmp.lt.s32.totalorder %s593_s26, %s593_s26 }
  0x59   :  { %473 = vmatpush3.bf16.msra.mxu1 %v470_v20  ;;  %439 = vmatprep.subr.bf16.mxu0 %v438_v30 }
  0x5a   :  { %475 = vmatprep.subr.bf16.mxu1 %v474_v27  ;;  %p600_p7 = por %p599_p6, %p598_p5 }
  0x5c   :  { %441 = vmatpush3.bf16.msra.mxu0 %v438_v30  ;;  %p601_p8 = pnand %p600_p7, %p594_p4 }
  0x5d   :  { %477 = vmatpush3.bf16.msra.mxu1 %v474_v27  ;;  %443 = vmatprep.subr.bf16.mxu0 %v442_v36 }
  0x5e   :  { %479 = vmatprep.subr.bf16.mxu1 %v478_v33 }
  0x60   :  { %445 = vmatpush3.bf16.msra.mxu0 %v442_v36 }
  0x61   :  { %481 = vmatpush3.bf16.msra.mxu1 %v478_v33  ;;  %447 = vmatprep.subr.bf16.mxu0 %v446_v42 }
  0x62   :  { %483 = vmatprep.subr.bf16.mxu1 %v482_v39 }
  0x64   :  { %449 = vmatpush3.bf16.msra.mxu0 %v446_v42 }
  0x65   :  { %485 = vmatpush3.bf16.msra.mxu1 %v482_v39  ;;  %451 = vmatprep.subr.bf16.mxu0 %v450_v46 }
  0x66   :  { %487 = vmatprep.subr.bf16.mxu1 %v486_v45 }
  0x68   :  { %453 = vmatpush3.bf16.msra.mxu0 %v450_v46 }
  0x69   :  { %489 = vmatpush3.bf16.msra.mxu1 %v486_v45  ;;  %455 = vmatprep.subr.bf16.mxu0 %v454_v49 }
  0x6c   :  { %424 = vmatmul.mubr.f32.vlgmr.msra.gmra.mrb[0].mxu1 %v80_v50  ;;  %457 = vmatpush3.bf16.msra.mxu0 %v454_v49 }
  0x6f   :  { %389 = vmatmul.mubr.f32.vlgmr.msra.gmra.mrb[0].mxu0 %v114_v51 }
 0x13f   :  { %v425_v53 = vpop.f32.mrb[0].mxu1 }
 0x140   :  { %v276_v54 = vadd.f32 %v425_v53, %v317_v52  ;;  %v270_v55 = vpop.f32.mrb[1].mxu1 }
 0x141   :  { %v271_v56 = vadd.f32 %v317_v52, %v270_v55 }
 0x142   :  { %v319_v57 = vmul.f32 -1.442695, %v276_v54  ;;  %v390_v59 = vpop.f32.mrb[0].mxu0 }
 0x143   :  { %v318_v58 = vmul.f32 -1.442695, %v271_v56  ;;  %v188_v60 = vpop.f32.mrb[1].mxu0  ;;  %v194_v2 = vadd.f32 %v390_v59, %v316_v1 }
 0x144   :  { %497 = vpow2.f32 %v319_v57  ;;  %v189_v3 = vadd.f32 %v316_v1, %v188_v60 }
 0x145   :  { %499 = vpow2.f32 %v318_v58 }
 0x14e   :  { %v498_v61 = vpop.eup %497 }
 0x14f   :  { %v500_v62 = vpop.eup %499  ;;  %v286_v63 = vadd.f32 1.0, %v498_v61 }
 0x150   :  { %v285_v0 = vadd.f32 1.0, %v500_v62 }
 0x151   :  { %501 = vrcp.f32 %v286_v63 }
 0x152   :  { %503 = vrcp.f32 %v285_v0 }
 0x15b   :  { %v502_v4 = vpop.eup %501 }
 0x15c   :  { %v504_v5 = vpop.eup %503  ;;  %v292_v6 = vmul.f32 %v502_v4, %v194_v2 }
 0x15d   :  { %v291_v7 = vmul.f32 %v504_v5, %v189_v3 }
 0x15e   :  { %v294_v8 = vadd.f32 %v292_v6, %v80_v50 }
 0x15f   :  { %v293_v9 = vadd.f32 %v291_v7, %v739_v16 }
 0x160   :  { %296 = vst [vmem:[#allocation10 + $0x8] sm:$0xff] %v294_v8 }
 0x161   :  { %295 = vst [vmem:[#allocation10] sm:$0xff] %v293_v9 }
 0x162   :  { %604 = shalt.err (!%p601_p8)
}
 0x163   :  { %s605_s28 = scalar_lea.hbm %s770_s6, 256 }
 0x164   :  { %p606_p9 = scmp.ne.s32.totalorder %s770_s6, %s605_s28  ;;  %p609_p10 = scmp.lt.u32.totalorder %s605_s28, %s770_s6 }
 0x166   :  { %p611_p11 = pnand %p609_p10, %p606_p9 }
 0x168   :  { %614 = shalt.err (!%p611_p11)
}
 0x169   :  { %308 = dma.vmem_to_hbm [thread:$0]  %s303_s25, 256, %s770_s6, [#allocation4], %s625_s9, %s625_s9, %s626_s10  }
 0x16a   :  { %621 = dma.done.wait [#allocation4], 256  }
 0x16b   :  { %622 = vsyncadd [#allocation4], 4294967040 }
 0x16c   :  { %312 = vsyncpa [#allocation3], 1 }
 0x16d   :  { %313 = vsyncpa [#allocation6], 1 }
 0x16e   :  { %314 = vsyncpa [#allocation9], 1 }
 0x16f   :  { %315 = vsyncpa [#allocation4], 1 }

</bundles_post_ra>
